<compile_context>
chip_gen: v7x
topology: tpu7x:2x2x1
jax: 0.10.0
libtpu: 0.0.40
codegen_flags: <defaults>
</compile_context>

<pallas_src>
import functools
import math

import jax
import jax.numpy as jnp
import numpy as np
from jax.experimental import pallas as pl
from jax.experimental.pallas import tpu as pltpu


def _round_up(x, m):
    return ((x + m - 1) // m) * m


def _pad_rows(x, target, value=0):
    pad = target - x.shape[0]
    if pad == 0:
        return x
    return jnp.pad(x, [(0, pad)] + [(0, 0)] * (x.ndim - 1), constant_values=value)


@functools.lru_cache(maxsize=1)
def _vmem_limit_bytes():
    """Generation-aware scoped-VMEM limit: ~75% of physical (96 MiB v5e/v6e, 48 MiB v7x)."""
    try:
        phys = int(pltpu.get_tpu_info().vmem_capacity_bytes)
        return int(max(32 << 20, min((phys * 3) // 4, 112 << 20)))
    except Exception:
        return 48 << 20


# ---------------------------------------------------------------------------
# Pallas kernels
# ---------------------------------------------------------------------------

def _attn_edge_kernel(x_ref, w_ref, b_ref, av_ref, o_ref):
    """raw_attn = LeakyReLU(cat_att @ W_attn + b, 0.2) @ av   (av folds the per-head
    attn_vec reduction into a (dout, num_head) matmul)."""
    acc = jnp.dot(x_ref[...], w_ref[...], preferred_element_type=jnp.float32)
    acc = acc + b_ref[...]
    acc = jnp.where(acc > 0, acc, 0.2 * acc)                  # LeakyReLU(0.2), f32 VPU
    o_ref[...] = jnp.dot(acc, av_ref[...], preferred_element_type=jnp.float32)


def _aggr_edge_kernel(x_ref, w_ref, b_ref, aval_ref, asum_ref, sel_ref, o_ref):
    """aggr = (aval / (asum + 1e-6)) expanded per-head  *  (cat_aggr @ W_aggr + b).
    Beta normalisation fused in-kernel; per-head expansion is a K=num_head matmul."""
    acc = jnp.dot(x_ref[...], w_ref[...], preferred_element_type=jnp.float32)
    acc = acc + b_ref[...]
    beta = aval_ref[...] / (asum_ref[...] + 1e-6)             # (te, H) f32
    beta_exp = jnp.dot(beta, sel_ref[...], preferred_element_type=jnp.float32)  # (te, dout)
    o_ref[...] = beta_exp * acc


def _scatter_add_kernel(idx_ref, val_ref, o_ref):
    """Segment-sum into a resident entity block.
    grid = (entity_blk [parallel], edge_blk [arbitrary]).
    Note: f32 operands at default MXU precision are bf16-truncated (the 0/1 one-hot is
    exact, the values are not), so sums are bf16-multiply / f32-accumulate."""
    @pl.when(pl.program_id(1) == 0)
    def _():
        o_ref[...] = jnp.zeros(o_ref.shape, o_ref.dtype)

    tile_n = o_ref.shape[0]
    idx = idx_ref[...]                                        # (te, 1) int32
    base = pl.program_id(0) * tile_n
    n_ids = base + jax.lax.broadcasted_iota(jnp.int32, (idx.shape[0], tile_n), 1)
    onehot = (idx == n_ids).astype(jnp.float32)               # (te, tile_n) exact 0/1
    o_ref[...] += jax.lax.dot_general(
        onehot, val_ref[...],
        dimension_numbers=(((0,), (0,)), ((), ())),
        preferred_element_type=jnp.float32)


# ---------------------------------------------------------------------------
# pallas_call wrappers
# ---------------------------------------------------------------------------

def attn_edge(cat_att, w_attn, b_attn, av_mat, tile_e):
    e0, d_cat = cat_att.shape
    dout = w_attn.shape[1]
    nh = av_mat.shape[1]
    te = min(tile_e, _round_up(e0, 8))
    e = _round_up(e0, te)

    x = _pad_rows(cat_att, e).astype(jnp.bfloat16)
    w = w_attn.astype(jnp.bfloat16)

    out = pl.pallas_call(
        _attn_edge_kernel,
        out_shape=jax.ShapeDtypeStruct((e, nh), jnp.float32),
        grid_spec=pltpu.PrefetchScalarGridSpec(
            num_scalar_prefetch=0, grid=(e // te,),
            in_specs=[pl.BlockSpec((te, d_cat), lambda i: (i, 0)),
                      pl.BlockSpec((d_cat, dout), lambda i: (0, 0)),
                      pl.BlockSpec((1, dout), lambda i: (0, 0)),
                      pl.BlockSpec((dout, nh), lambda i: (0, 0))],
            out_specs=pl.BlockSpec((te, nh), lambda i: (i, 0))),
        compiler_params=pltpu.CompilerParams(
            dimension_semantics=("parallel",), vmem_limit_bytes=_vmem_limit_bytes()),
    )(x, w, b_attn, av_mat)
    return out[:e0]


def aggr_edge(cat_aggr, w_aggr, b_aggr, aval, asum_g, sel8, tile_e):
    e0, d_cat = cat_aggr.shape
    dout = w_aggr.shape[1]
    nh = sel8.shape[0]
    te = min(tile_e, _round_up(e0, 8))
    e = _round_up(e0, te)

    x = _pad_rows(cat_aggr, e).astype(jnp.bfloat16)
    w = w_aggr.astype(jnp.bfloat16)
    aval_p = _pad_rows(aval.astype(jnp.float32), e)
    asum_p = _pad_rows(asum_g.astype(jnp.float32), e, value=1.0)

    out = pl.pallas_call(
        _aggr_edge_kernel,
        out_shape=jax.ShapeDtypeStruct((e, dout), jnp.float32),
        grid_spec=pltpu.PrefetchScalarGridSpec(
            num_scalar_prefetch=0, grid=(e // te,),
            in_specs=[pl.BlockSpec((te, d_cat), lambda i: (i, 0)),
                      pl.BlockSpec((d_cat, dout), lambda i: (0, 0)),
                      pl.BlockSpec((1, dout), lambda i: (0, 0)),
                      pl.BlockSpec((te, nh), lambda i: (i, 0)),
                      pl.BlockSpec((te, nh), lambda i: (i, 0)),
                      pl.BlockSpec((nh, dout), lambda i: (0, 0))],
            out_specs=pl.BlockSpec((te, dout), lambda i: (i, 0))),
        compiler_params=pltpu.CompilerParams(
            dimension_semantics=("parallel",), vmem_limit_bytes=_vmem_limit_bytes()),
    )(x, w, b_aggr, aval_p, asum_p, sel8)
    return out[:e0]


def scatter_add(idx, vals, num_seg, tile_e, tile_n):
    """Segment-sum of vals (E, d) over idx into (num_seg, d); features kept at natural
    width (block last dim == full array dim), edges streamed once per entity block."""
    e0, d = vals.shape
    te = min(tile_e, _round_up(e0, 8))
    e = _round_up(e0, te)
    tn = min(tile_n, _round_up(num_seg, 128))
    n = _round_up(num_seg, tn)
    # v7x megacore: prefer >= 2 parallel entity blocks when the graph is big enough
    # (costs one extra edge re-read, gains the second TensorCore; no effect on v5e/v6e).
    if n // tn < 2 and num_seg > 128:
        tn = _round_up(-(-num_seg // 2), 128)
        n = _round_up(num_seg, tn)

    idx_p = jnp.full((e, 1), n, jnp.int32).at[:e0, 0].set(idx.astype(jnp.int32))
    val_p = _pad_rows(vals.astype(jnp.float32), e)

    out = pl.pallas_call(
        _scatter_add_kernel,
        out_shape=jax.ShapeDtypeStruct((n, d), jnp.float32),
        grid_spec=pltpu.PrefetchScalarGridSpec(
            num_scalar_prefetch=0, grid=(n // tn, e // te),
            in_specs=[pl.BlockSpec((te, 1), lambda ni, ei: (ei, 0)),
                      pl.BlockSpec((te, d), lambda ni, ei: (ei, 0))],
            out_specs=pl.BlockSpec((tn, d), lambda ni, ei: (ni, 0))),
        compiler_params=pltpu.CompilerParams(
            dimension_semantics=("parallel", "arbitrary"),
            vmem_limit_bytes=_vmem_limit_bytes()),
    )(idx_p, val_p)
    return out[:num_seg]


# ---------------------------------------------------------------------------
# Forward pass (Pallas path)
# ---------------------------------------------------------------------------

def ingram_entity_forward(emb_ent, emb_rel, head_idxs, tail_idxs, rel_idxs, params,
                          num_head=8, tile_e=1024, tile_e_scatter=512, tile_n=2048):
    num_ent = emb_ent.shape[0]
    dim_rel = emb_rel.shape[1]
    dout = params["w_attn"].shape[1]
    dim_hid = dout // num_head
    assert num_head * dim_hid == dout

    rel_e = jnp.take(emb_rel, rel_idxs, axis=0).astype(jnp.float32)   # (E0, dim_rel)

    # ent_freq + self_rel numerator in one narrow scatter-add (extra ones lane).
    # TODO(synk): for 128-aligned dim_rel, fold the count into an existing padding
    # lane instead of widening by one.
    vals0 = jnp.concatenate([rel_e, jnp.ones((rel_e.shape[0], 1), jnp.float32)], axis=-1)
    acc0 = scatter_add(tail_idxs, vals0, num_ent, tile_e_scatter, tile_n)
    ent_freq = acc0[:, dim_rel:dim_rel + 1]
    self_rel = acc0[:, :dim_rel] / (ent_freq + 1e-6)

    arange_n = jnp.arange(num_ent, dtype=tail_idxs.dtype)
    head_f = jnp.concatenate([head_idxs, arange_n])
    tail_f = jnp.concatenate([tail_idxs, arange_n])
    emb_rels = jnp.concatenate([rel_e, self_rel], axis=0)              # (E, dim_rel)

    ent_tail = jnp.take(emb_ent, tail_f, axis=0)
    ent_head = jnp.take(emb_ent, head_f, axis=0)

    # Fused feature slabs (same HBM bytes as the split version, one MXU push per tile).
    cat_att = jnp.concatenate([ent_tail, ent_head, emb_rels], axis=-1)   # (E, 2*de+dr)
    cat_aggr = jnp.concatenate([ent_head, emb_rels], axis=-1)            # (E, de+dr)

    # Narrow per-head selectors (num_head lanes, not 128).
    head_of_col = jnp.arange(dout) // dim_hid
    av_mat = (head_of_col[:, None] == jnp.arange(num_head)[None, :]
              ).astype(jnp.float32) * params["attn_vec"].reshape(dout, 1)   # (dout, H)
    sel8 = (jnp.arange(num_head)[:, None] == head_of_col[None, :]
            ).astype(jnp.float32)                                           # (H, dout)

    raw = attn_edge(cat_att, params["w_attn"], params["b_attn"], av_mat, tile_e)  # (E, H)

    # Segment softmax: softmax is invariant to any per-head constant shift, so a
    # global per-head max replaces the per-segment (scatter) max — mathematically
    # identical up to the +1e-6 denominator eps and exp rounding.
    amax = jnp.max(raw, axis=0, keepdims=True)                 # (1, H)
    aval = jnp.exp(raw - amax)                                 # (E, H)
    asum = scatter_add(tail_f, aval, num_ent, tile_e_scatter, tile_n)   # (N, H)
    asum_g = jnp.take(asum, tail_f, axis=0)                    # (E, H)

    aggr = aggr_edge(cat_aggr, params["w_aggr"], params["b_aggr"],
                     aval, asum_g, sel8, tile_e)               # (E, dout)
    out = scatter_add(tail_f, aggr, num_ent, tile_e_scatter, tile_n)    # (N, dout)
    return out


# ---------------------------------------------------------------------------
# Pure-JAX reference (faithful to the torch module, for numerical verification)
# ---------------------------------------------------------------------------

def ingram_entity_reference(emb_ent, emb_rel, head_idxs, tail_idxs, rel_idxs,
                            params, num_head=8):
    num_ent, _ = emb_ent.shape
    dout = params["w_attn"].shape[1]
    dim_hid = dout // num_head

    ones = jnp.ones((tail_idxs.shape[0],), jnp.float32)
    ent_freq = jax.ops.segment_sum(ones, tail_idxs, num_ent)[:, None]
    rel_e = emb_rel[rel_idxs]
    self_rel = jax.ops.segment_sum(rel_e, tail_idxs, num_ent) / (ent_freq + 1e-6)

    arange_n = jnp.arange(num_ent, dtype=tail_idxs.dtype)
    head_f = jnp.concatenate([head_idxs, arange_n])
    tail_f = jnp.concatenate([tail_idxs, arange_n])
    emb_rels = jnp.concatenate([rel_e, self_rel], axis=0)

    cat_att = jnp.concatenate([emb_ent[tail_f], emb_ent[head_f], emb_rels], axis=-1)
    pre = cat_att @ params["w_attn"] + params["b_attn"]
    pre = jnp.where(pre > 0, pre, 0.2 * pre).reshape(-1, num_head, dim_hid)
    raw = (pre * params["attn_vec"]).sum(-1, keepdims=True)            # (E, H, 1)

    amax = jax.ops.segment_max(raw, tail_f, num_ent)
    aval = jnp.exp(raw - amax[tail_f])
    asum = jax.ops.segment_sum(aval, tail_f, num_ent)
    beta = aval / (asum[tail_f] + 1e-6)

    cat_aggr = jnp.concatenate([emb_ent[head_f], emb_rels], axis=-1)
    aggr = beta * (cat_aggr @ params["w_aggr"] + params["b_aggr"]).reshape(
        -1, num_head, dim_hid)
    out = jax.ops.segment_sum(aggr, tail_f, num_ent)
    return out.reshape(num_ent, -1)


# ---------------------------------------------------------------------------
# Parameters (deterministic xavier-normal-like init, gain = sqrt(2))
# ---------------------------------------------------------------------------

def init_params(key, dim_in_ent, dim_rel, dim_out_ent, num_head):
    gain = math.sqrt(2.0)

    def xavier(k, shape, fan_in, fan_out):
        std = gain * math.sqrt(2.0 / (fan_in + fan_out))
        return std * jax.random.normal(k, shape, jnp.float32)

    k1, k2, k3 = jax.random.split(key, 3)
    ka = 2 * dim_in_ent + dim_rel
    kb = dim_in_ent + dim_rel
    dim_hid = dim_out_ent // num_head
    return {
        # stored as (in_features, out_features) == torch weight transposed
        "w_attn": xavier(k1, (ka, dim_out_ent), ka, dim_out_ent),
        "b_attn": jnp.zeros((1, dim_out_ent), jnp.float32),
        "attn_vec": xavier(k2, (1, num_head, dim_hid), dim_hid, num_head),
        "w_aggr": xavier(k3, (kb, dim_out_ent), kb, dim_out_ent),
        "b_aggr": jnp.zeros((1, dim_out_ent), jnp.float32),
    }


# ---------------------------------------------------------------------------
# Demo
# ---------------------------------------------------------------------------

if __name__ == "__main__":
    num_ent, num_edges, num_rel = 32, 64, 16
    dim_in_ent = 32
    dim_rel = 32
    dim_out_ent = 32
    num_head = 8

    key = jax.random.PRNGKey(0)
    k = jax.random.split(key, 6)
    emb_ent = jax.random.normal(k[0], (num_ent, dim_in_ent), jnp.float32)
    emb_rel = jax.random.normal(k[1], (num_rel, dim_rel), jnp.float32)
    head_idxs = jax.random.randint(k[2], (num_edges,), 0, num_ent, jnp.int32)
    tail_idxs = jax.random.randint(k[3], (num_edges,), 0, num_ent, jnp.int32)
    rel_idxs = jax.random.randint(k[4], (num_edges,), 0, num_rel, jnp.int32)

    params = init_params(k[5], dim_in_ent, dim_rel, dim_out_ent, num_head)

    out = ingram_entity_forward(emb_ent, emb_rel, head_idxs, tail_idxs, rel_idxs,
                                params, num_head=num_head)
    out = jax.block_until_ready(out)
    assert out.shape == (num_ent, dim_out_ent)

    ref = ingram_entity_reference(emb_ent, emb_rel, head_idxs, tail_idxs, rel_idxs,
                                  params, num_head=num_head)
    ref = jax.block_until_ready(ref)

    # Tolerance covers (a) bf16 MXU operands / bf16-truncated f32 dots with f32
    # accumulation and (b) the global-vs-segment max interaction with the +1e-6 eps.
    max_err = float(jnp.max(jnp.abs(out - ref)))
    assert np.allclose(np.asarray(out), np.asarray(ref), atol=5e-2, rtol=5e-2), (
        "mismatch vs reference, max abs err = %g" % max_err)

    print("KERNEL_OK")
</pallas_src>

<mosaic_0001>
module attributes {stable_mosaic.version = 11 : i64} {
  func.func @_scatter_add_kernel(%arg0: i32, %arg1: i32, %arg2: memref<64x1xi32, #tpu.memory_space<vmem>>, %arg3: memref<64x33xf32, #tpu.memory_space<vmem>>, %arg4: memref<128x33xf32, #tpu.memory_space<vmem>>) attributes {dimension_semantics = [#tpu.dimension_semantics<parallel>, #tpu.dimension_semantics<arbitrary>], iteration_bounds = array<i64: 1, 1>, scalar_prefetch = 0 : i64, scratch_operands = 0 : i64, tpu.core_type = #tpu.core_type<tc>, window_params = [{transform_indices = @transform_0, window_bounds = array<i64: 64, 1>}, {transform_indices = @transform_1, window_bounds = array<i64: 64, 33>}, {transform_indices = @transform_2, window_bounds = array<i64: 128, 33>}]} {
    %c0_i32 = arith.constant 0 : i32
    %0 = arith.cmpi eq, %arg1, %c0_i32 : i32
    %1 = arith.extui %0 : i1 to i32
    %c0_i32_0 = arith.constant 0 : i32
    %2 = arith.cmpi ne, %1, %c0_i32_0 : i32
    scf.if %2 {
      %cst_8 = arith.constant 0.000000e+00 : f32
      %17 = vector.broadcast %cst_8 : f32 to vector<128x33xf32>
      %c0_9 = arith.constant 0 : index
      %c0_10 = arith.constant 0 : index
      %18 = vector.load %arg4[%c0_9, %c0_10] : memref<128x33xf32, #tpu.memory_space<vmem>>, vector<128x33xf32>
      tpu.vector_store %arg4[%c0_9, %c0_10], %17 {strides = array<i32>} : memref<128x33xf32, #tpu.memory_space<vmem>>, vector<128x33xf32>,
    } else {
    }
    %c0 = arith.constant 0 : index
    %c0_1 = arith.constant 0 : index
    %3 = vector.load %arg2[%c0, %c0_1] : memref<64x1xi32, #tpu.memory_space<vmem>>, vector<64x1xi32>
    %c128_i32 = arith.constant 128 : i32
    %4 = arith.muli %arg0, %c128_i32 : i32
    %5 = tpu.iota {dimensions = array<i32: 1>} : vector<64x128xi32>
    %6 = vector.broadcast %4 : i32 to vector<64x128xi32>
    %7 = arith.addi %6, %5 : vector<64x128xi32>
    %8 = vector.broadcast %3 : vector<64x1xi32> to vector<64x128xi32>
    %9 = arith.cmpi eq, %8, %7 : vector<64x128xi32>
    %10 = arith.extui %9 : vector<64x128xi1> to vector<64x128xi32>
    %11 = arith.sitofp %10 : vector<64x128xi32> to vector<64x128xf32>
    %c0_2 = arith.constant 0 : index
    %c0_3 = arith.constant 0 : index
    %12 = vector.load %arg4[%c0_2, %c0_3] : memref<128x33xf32, #tpu.memory_space<vmem>>, vector<128x33xf32>
    %c0_4 = arith.constant 0 : index
    %c0_5 = arith.constant 0 : index
    %13 = vector.load %arg3[%c0_4, %c0_5] : memref<64x33xf32, #tpu.memory_space<vmem>>, vector<64x33xf32>
    %cst = arith.constant dense<0.000000e+00> : vector<128x33xf32>
    %14 = tpu.matmul %11, %13, %cst {dimension_numbers = #tpu.dot_dimension_numbers<[0], [0], [1], [1], [0, 1, 1, 1], [], []>} : vector<64x128xf32>, vector<64x33xf32>, vector<128x33xf32> -> vector<128x33xf32>
    %15 = arith.addf %12, %14 : vector<128x33xf32>
    %c0_6 = arith.constant 0 : index
    %c0_7 = arith.constant 0 : index
    %16 = vector.load %arg4[%c0_6, %c0_7] : memref<128x33xf32, #tpu.memory_space<vmem>>, vector<128x33xf32>
    tpu.vector_store %arg4[%c0_6, %c0_7], %15 {strides = array<i32>} : memref<128x33xf32, #tpu.memory_space<vmem>>, vector<128x33xf32>,
    return
  }
  func.func @transform_0(%arg0: i32, %arg1: i32) -> (i32, i32) {
    %c0_i32 = arith.constant 0 : i32
    %c0_i32_0 = arith.constant 0 : i32
    return %arg1, %c0_i32 : i32, i32
  }
  func.func @transform_1(%arg0: i32, %arg1: i32) -> (i32, i32) {
    %c0_i32 = arith.constant 0 : i32
    %c0_i32_0 = arith.constant 0 : i32
    return %arg1, %c0_i32 : i32, i32
  }
  func.func @transform_2(%arg0: i32, %arg1: i32) -> (i32, i32) {
    %c0_i32 = arith.constant 0 : i32
    %c0_i32_0 = arith.constant 0 : i32
    return %arg0, %c0_i32 : i32, i32
  }
}

</mosaic_0001>

<bundles_post_ra>
// kernel: tpu_custom_call.1
= control target key start
LH: loop header
LB: loop body
LE: loop exit
PB: predicated region body
PF: predicated region fallthrough
CT: control target
= control target key end

     0   :  { %v496_v0 = vmov 0   ;;  %v41_v18 = vlaneseq  ;;  %v497_v23 = vmov 0.0   ;;  %vm15_vm8 = vcmask 269312   ;;  %s753_s0 = inlined_call_operand.vmem [shape: s32[64,1], index: 0, kind: input, shape index: {}]   ;;  %s754_s1 = inlined_call_operand.vmem [shape: f32[64,33], index: 1, kind: input, shape index: {}]   ;;  %s755_s2 = inlined_call_operand.vmem [shape: f32[128,33], index: 2, kind: output, shape index: {}]  }
   0x1   :  { %495 = vset.pattern.permute.xlu1 %v496_v0  ;;  %494 = vset.pattern.permute.xlu0 %v496_v0  ;;  %v34_v1 = vld [vmem:[%s753_s0 + $0x10] sm:$0xff]  ;;  %v32_v2 = vld [vmem:[%s753_s0] sm:$0xff]  ;;  %v35_v3 = vld [vmem:[%s753_s0 + $0x18] sm:$0xff]  ;;  %17 = vst.msk [vmem:[%s755_s2 + $0x8] sm:$0xff] %vm15_vm8, %v497_v23  ;;  %vm149_vm9 = vcmask 523264  }
   0x2   :  { %52 = vperm.xlu1 %495, %v34_v1   ;;  %46 = vperm.xlu0 %494, %v32_v2   ;;  %v33_v4 = vld [vmem:[%s753_s0 + $0x8] sm:$0xff]  ;;  %v36_v6 = vld [vmem:[%s753_s0 + $0x20] sm:$0xff]  ;;  %v39_v7 = vld [vmem:[%s753_s0 + $0x38] sm:$0xff]  ;;  %v42_v19 = vand.u32 127, %v41_v18  ;;  %16 = vst.msk [vmem:[%s755_s2] sm:$0xff] %vm15_vm8, %v497_v23 }
   0x3   :  { %v37_v5 = vld [vmem:[%s753_s0 + $0x28] sm:$0xff]  ;;  %v38_v8 = vld [vmem:[%s753_s0 + $0x30] sm:$0xff]  ;;  %v109_v9 = vld [vmem:[%s754_s1] sm:$0xff]  ;;  %18 = vst.msk [vmem:[%s755_s2 + $0x10] sm:$0xff] %vm15_vm8, %v497_v23 }
   0x4   :  { %v110_v10 = vld [vmem:[%s754_s1 + $0x8] sm:$0xff]  ;;  %v111_v11 = vld [vmem:[%s754_s1 + $0x10] sm:$0xff]  ;;  %v112_v13 = vld [vmem:[%s754_s1 + $0x18] sm:$0xff]  ;;  %19 = vst.msk [vmem:[%s755_s2 + $0x18] sm:$0xff] %vm15_vm8, %v497_v23 }
   0x5   :  { %v468_v12 = vpack.c.bf16 %v110_v10, %v109_v9  ;;  %v472_v14 = vpack.c.bf16 %v112_v13, %v111_v11  ;;  %v113_v15 = vld [vmem:[%s754_s1 + $0x20] sm:$0xff]  ;;  %v114_v16 = vld [vmem:[%s754_s1 + $0x28] sm:$0xff]  ;;  %v115_v21 = vld [vmem:[%s754_s1 + $0x30] sm:$0xff]  ;;  %20 = vst.msk [vmem:[%s755_s2 + $0x20] sm:$0xff] %vm15_vm8, %v497_v23 }
   0x6   :  { %55 = vperm.xlu1 %495, %v35_v3   ;;  %49 = vperm.xlu0 %494, %v33_v4   ;;  %v476_v17 = vpack.c.bf16 %v114_v16, %v113_v15  ;;  %v116_v22 = vld [vmem:[%s754_s1 + $0x38] sm:$0xff]  ;;  %21 = vst.msk [vmem:[%s755_s2 + $0x28] sm:$0xff] %vm15_vm8, %v497_v23  ;;  %22 = vst.msk [vmem:[%s755_s2 + $0x30] sm:$0xff] %vm15_vm8, %v497_v23 }
   0x7   :  { %469 = vmatprep.subr.bf16.mxu0 %v468_v12  ;;  %484 = vmatprep.subr.bf16.mxu1 %v468_v12  ;;  %v480_v25 = vpack.c.bf16 %v116_v22, %v115_v21  ;;  %23 = vst.msk [vmem:[%s755_s2 + $0x38] sm:$0xff] %vm15_vm8, %v497_v23  ;;  %24 = vst.msk [vmem:[%s755_s2 + $0x40] sm:$0xff] %vm15_vm8, %v497_v23 }
   0x8   :  { %471 = vmatpush3.bf16.msra.mxu0 %v468_v12  ;;  %488 = vmatpush3.bf16.msra.mxu1 %v468_v12  ;;  %25 = vst.msk [vmem:[%s755_s2 + $0x48] sm:$0xff] %vm15_vm8, %v497_v23  ;;  %26 = vst.msk [vmem:[%s755_s2 + $0x50] sm:$0xff] %vm15_vm8, %v497_v23  ;;  %v94_v56 = vld [vmem:[%s755_s2 + $0x8] sm:$0xff] }
   0x9   :  { %473 = vmatprep.subr.bf16.mxu0 %v472_v14  ;;  %485 = vmatprep.subr.bf16.mxu1 %v472_v14  ;;  %27 = vst.msk [vmem:[%s755_s2 + $0x58] sm:$0xff] %vm15_vm8, %v497_v23  ;;  %28 = vst.msk [vmem:[%s755_s2 + $0x60] sm:$0xff] %vm15_vm8, %v497_v23  ;;  %v93_v57 = vld [vmem:[%s755_s2] sm:$0xff] }
   0xa   :  { %61 = vperm.xlu1 %495, %v37_v5   ;;  %58 = vperm.xlu0 %494, %v36_v6   ;;  %29 = vst.msk [vmem:[%s755_s2 + $0x68] sm:$0xff] %vm15_vm8, %v497_v23  ;;  %30 = vst.msk [vmem:[%s755_s2 + $0x70] sm:$0xff] %vm15_vm8, %v497_v23  ;;  %v95_v63 = vld [vmem:[%s755_s2 + $0x10] sm:$0xff] }
   0xb   :  { %31 = vst.msk [vmem:[%s755_s2 + $0x78] sm:$0xff] %vm15_vm8, %v497_v23  ;;  %v96_v62 = vld [vmem:[%s755_s2 + $0x18] sm:$0xff] }
   0xc   :  { %475 = vmatpush3.bf16.msra.mxu0 %v472_v14  ;;  %489 = vmatpush3.bf16.msra.mxu1 %v472_v14  ;;  %v97_v5 = vld [vmem:[%s755_s2 + $0x20] sm:$0xff] }
   0xd   :  { %477 = vmatprep.subr.bf16.mxu0 %v476_v17  ;;  %486 = vmatprep.subr.bf16.mxu1 %v476_v17  ;;  %v98_v4 = vld [vmem:[%s755_s2 + $0x28] sm:$0xff]  ;;  %v99_v11 = vld [vmem:[%s755_s2 + $0x30] sm:$0xff] }
   0xe   :  { %67 = vperm.xlu1 %495, %v39_v7   ;;  %64 = vperm.xlu0 %494, %v38_v8   ;;  %v100_v10 = vld [vmem:[%s755_s2 + $0x38] sm:$0xff] }
   0xf   :  { %v102_v16 = vld [vmem:[%s755_s2 + $0x48] sm:$0xff] }
  0x10   :  { %479 = vmatpush3.bf16.msra.mxu0 %v476_v17  ;;  %490 = vmatpush3.bf16.msra.mxu1 %v476_v17  ;;  %v101_v17 = vld [vmem:[%s755_s2 + $0x40] sm:$0xff]  ;;  %v104_v22 = vld [vmem:[%s755_s2 + $0x58] sm:$0xff] }
  0x11   :  { %481 = vmatprep.subr.bf16.mxu0 %v480_v25  ;;  %487 = vmatprep.subr.bf16.mxu1 %v480_v25 }
  0x14   :  { %483 = vmatpush3.bf16.msra.mxu0 %v480_v25  ;;  %491 = vmatpush3.bf16.msra.mxu1 %v480_v25 }
  0x81   :  { %v47_v20 = vpop.permute.xlu0 %46  ;;  %v53_v26 = vpop.permute.xlu1 %52 }
  0x82   :  { %vm69_vm0 = vcmp.eq.s32.totalorder %v47_v20, %v42_v19  ;;  %vm71_vm1 = vcmp.eq.s32.totalorder %v53_v26, %v42_v19 }
  0x83   :  { %v380_v24 = vsel %vm69_vm0, 1.0, %v497_v23  ;;  %v382_v29 = vsel %vm71_vm1, 1.0, %v497_v23 }
  0x84   :  { %117 = vxpose.xlu0.b32.start [1/8] (short) %v380_v24, 128 }
  0x85   :  { %v50_v27 = vpop.permute.xlu0 %49  ;;  %v56_v30 = vpop.permute.xlu1 %55 }
  0x86   :  { %vm70_vm2 = vcmp.eq.s32.totalorder %v50_v27, %v42_v19  ;;  %vm72_vm3 = vcmp.eq.s32.totalorder %v56_v30, %v42_v19 }
  0x87   :  { %v381_v28 = vsel %vm70_vm2, 1.0, %v497_v23  ;;  %v383_v32 = vsel %vm72_vm3, 1.0, %v497_v23 }
  0x88   :  { %118 = vxpose.xlu0.b32.cont [2/8] (short) %v381_v28, 128  ;;  %v106_v28 = vld [vmem:[%s755_s2 + $0x68] sm:$0xff] }
  0x89   :  { %v59_v31 = vpop.permute.xlu0 %58  ;;  %v62_v33 = vpop.permute.xlu1 %61 }
  0x8a   :  { %vm73_vm4 = vcmp.eq.s32.totalorder %v59_v31, %v42_v19  ;;  %vm74_vm5 = vcmp.eq.s32.totalorder %v62_v33, %v42_v19 }
  0x8b   :  { %v384_v34 = vsel %vm73_vm4, 1.0, %v497_v23  ;;  %v385_v36 = vsel %vm74_vm5, 1.0, %v497_v23 }
  0x8c   :  { %119 = vxpose.xlu0.b32.cont [3/8] (short) %v382_v29, 128  ;;  %v105_v29 = vld [vmem:[%s755_s2 + $0x60] sm:$0xff] }
  0x8d   :  { %v65_v35 = vpop.permute.xlu0 %64  ;;  %v68_v37 = vpop.permute.xlu1 %67 }
  0x8e   :  { %vm75_vm6 = vcmp.eq.s32.totalorder %v65_v35, %v42_v19  ;;  %vm76_vm7 = vcmp.eq.s32.totalorder %v68_v37, %v42_v19  ;;  %v107_v35 = vld [vmem:[%s755_s2 + $0x70] sm:$0xff] }
  0x8f   :  { %v386_v38 = vsel %vm75_vm6, 1.0, %v497_v23  ;;  %v387_v39 = vsel %vm76_vm7, 1.0, %v497_v23  ;;  %v103_v23 = vld [vmem:[%s755_s2 + $0x50] sm:$0xff] }
  0x90   :  { %120 = vxpose.xlu0.b32.cont [4/8] (short) %v383_v32, 128 }
  0x94   :  { %121 = vxpose.xlu0.b32.cont [5/8] (short) %v384_v34, 128  ;;  %v108_v34 = vld [vmem:[%s755_s2 + $0x78] sm:$0xff] }
  0x98   :  { %122 = vxpose.xlu0.b32.cont [6/8] (short) %v385_v36, 128 }
  0x9c   :  { %123 = vxpose.xlu0.b32.cont [7/8] (short) %v386_v38, 128 }
  0xa0   :  { %124 = vxpose.xlu0.b32.end [8/8] (short) %v387_v39, 128 }
 0x104   :  { %v133_v40 = vpop.trf.xlu0 }
 0x105   :  { %444 = vmatprep.mubr.msk.f32.mxu0 %vm149_vm9, %v133_v40 }
 0x108   :  { %v134_v41 = vpop.trf.xlu0 }
 0x109   :  { %445 = vmatmul.mubr.msk.f32.vlgmr.msra.gmra.mrb[0].mxu0 %vm149_vm9, %v134_v41 }
 0x10c   :  { %v135_v42 = vpop.trf.xlu0 }
 0x10d   :  { %447 = vmatprep.mubr.msk.f32.mxu0 %vm149_vm9, %v135_v42 }
 0x110   :  { %v136_v43 = vpop.trf.xlu0 }
 0x111   :  { %448 = vmatmul.mubr.msk.f32.gmra.mrb[2].mxu0 %vm149_vm9, %v136_v43 }
 0x114   :  { %v137_v44 = vpop.trf.xlu0 }
 0x115   :  { %450 = vmatprep.mubr.msk.f32.mxu0 %vm149_vm9, %v137_v44 }
 0x118   :  { %v138_v45 = vpop.trf.xlu0 }
 0x119   :  { %451 = vmatmul.mubr.msk.f32.gmra.mrb[4].mxu0 %vm149_vm9, %v138_v45 }
 0x11c   :  { %v139_v46 = vpop.trf.xlu0 }
 0x11d   :  { %453 = vmatprep.mubr.msk.f32.mxu0 %vm149_vm9, %v139_v46 }
 0x120   :  { %v140_v47 = vpop.trf.xlu0 }
 0x121   :  { %454 = vmatmul.mubr.msk.f32.gmra.mrb[6].mxu0 %vm149_vm9, %v140_v47 }
 0x124   :  { %v141_v48 = vpop.trf.xlu0 }
 0x125   :  { %456 = vmatprep.mubr.msk.f32.mxu1 %vm149_vm9, %v141_v48 }
 0x128   :  { %v142_v49 = vpop.trf.xlu0 }
 0x129   :  { %457 = vmatmul.mubr.msk.f32.vlgmr.msra.gmra.mrb[0].mxu1 %vm149_vm9, %v142_v49 }
 0x12c   :  { %v143_v50 = vpop.trf.xlu0 }
 0x12d   :  { %459 = vmatprep.mubr.msk.f32.mxu1 %vm149_vm9, %v143_v50 }
 0x130   :  { %v144_v51 = vpop.trf.xlu0 }
 0x131   :  { %460 = vmatmul.mubr.msk.f32.gmra.mrb[2].mxu1 %vm149_vm9, %v144_v51 }
 0x134   :  { %v145_v52 = vpop.trf.xlu0 }
 0x135   :  { %462 = vmatprep.mubr.msk.f32.mxu1 %vm149_vm9, %v145_v52 }
 0x138   :  { %v146_v53 = vpop.trf.xlu0 }
 0x139   :  { %463 = vmatmul.mubr.msk.f32.gmra.mrb[4].mxu1 %vm149_vm9, %v146_v53 }
 0x13c   :  { %v147_v54 = vpop.trf.xlu0 }
 0x13d   :  { %465 = vmatprep.mubr.msk.f32.mxu1 %vm149_vm9, %v147_v54 }
 0x140   :  { %v148_v55 = vpop.trf.xlu0 }
 0x141   :  { %466 = vmatmul.mubr.msk.f32.gmra.mrb[6].mxu1 %vm149_vm9, %v148_v55 }
 0x1dc   :  { %v446_v58 = vpop.f32.mrb[0].mxu0 }
 0x1dd   :  { %v344_v59 = vadd.f32 %v446_v58, %v94_v56  ;;  %v264_v60 = vpop.f32.mrb[1].mxu0 }
 0x1de   :  { %v343_v61 = vadd.f32 %v264_v60, %v93_v57 }
 0x1df   :  { %361 = vst.msk [vmem:[%s755_s2 + $0x8] sm:$0xff] %vm15_vm8, %v344_v59 }
 0x1e0   :  { %360 = vst.msk [vmem:[%s755_s2] sm:$0xff] %vm15_vm8, %v343_v61 }
 0x1e4   :  { %v449_v0 = vpop.f32.mrb[2].mxu0 }
 0x1e5   :  { %v346_v1 = vadd.f32 %v449_v0, %v96_v62  ;;  %v274_v2 = vpop.f32.mrb[3].mxu0 }
 0x1e6   :  { %v345_v3 = vadd.f32 %v274_v2, %v95_v63 }
 0x1e7   :  { %363 = vst.msk [vmem:[%s755_s2 + $0x18] sm:$0xff] %vm15_vm8, %v346_v1 }
 0x1e8   :  { %362 = vst.msk [vmem:[%s755_s2 + $0x10] sm:$0xff] %vm15_vm8, %v345_v3 }
 0x1ec   :  { %v452_v6 = vpop.f32.mrb[4].mxu0 }
 0x1ed   :  { %v348_v7 = vadd.f32 %v452_v6, %v98_v4  ;;  %v284_v8 = vpop.f32.mrb[5].mxu0 }
 0x1ee   :  { %v347_v9 = vadd.f32 %v284_v8, %v97_v5 }
 0x1ef   :  { %365 = vst.msk [vmem:[%s755_s2 + $0x28] sm:$0xff] %vm15_vm8, %v348_v7 }
 0x1f0   :  { %364 = vst.msk [vmem:[%s755_s2 + $0x20] sm:$0xff] %vm15_vm8, %v347_v9 }
 0x1f4   :  { %v455_v12 = vpop.f32.mrb[6].mxu0 }
 0x1f5   :  { %v350_v13 = vadd.f32 %v455_v12, %v100_v10  ;;  %v294_v14 = vpop.f32.mrb[7].mxu0 }
 0x1f6   :  { %v349_v15 = vadd.f32 %v294_v14, %v99_v11 }
 0x1f7   :  { %367 = vst.msk [vmem:[%s755_s2 + $0x38] sm:$0xff] %vm15_vm8, %v350_v13 }
 0x1f8   :  { %366 = vst.msk [vmem:[%s755_s2 + $0x30] sm:$0xff] %vm15_vm8, %v349_v15 }
 0x1fc   :  { %v458_v18 = vpop.f32.mrb[0].mxu1 }
 0x1fd   :  { %v352_v19 = vadd.f32 %v458_v18, %v102_v16  ;;  %v304_v20 = vpop.f32.mrb[1].mxu1 }
 0x1fe   :  { %v351_v21 = vadd.f32 %v304_v20, %v101_v17 }
 0x1ff   :  { %369 = vst.msk [vmem:[%s755_s2 + $0x48] sm:$0xff] %vm15_vm8, %v352_v19 }
 0x200   :  { %368 = vst.msk [vmem:[%s755_s2 + $0x40] sm:$0xff] %vm15_vm8, %v351_v21 }
 0x204   :  { %v461_v24 = vpop.f32.mrb[2].mxu1 }
 0x205   :  { %v354_v25 = vadd.f32 %v461_v24, %v104_v22  ;;  %v314_v26 = vpop.f32.mrb[3].mxu1 }
 0x206   :  { %v353_v27 = vadd.f32 %v314_v26, %v103_v23 }
 0x207   :  { %371 = vst.msk [vmem:[%s755_s2 + $0x58] sm:$0xff] %vm15_vm8, %v354_v25 }
 0x208   :  { %370 = vst.msk [vmem:[%s755_s2 + $0x50] sm:$0xff] %vm15_vm8, %v353_v27 }
 0x20c   :  { %v464_v30 = vpop.f32.mrb[4].mxu1 }
 0x20d   :  { %v356_v31 = vadd.f32 %v464_v30, %v106_v28  ;;  %v324_v32 = vpop.f32.mrb[5].mxu1 }
 0x20e   :  { %v355_v33 = vadd.f32 %v324_v32, %v105_v29 }
 0x20f   :  { %373 = vst.msk [vmem:[%s755_s2 + $0x68] sm:$0xff] %vm15_vm8, %v356_v31 }
 0x210   :  { %372 = vst.msk [vmem:[%s755_s2 + $0x60] sm:$0xff] %vm15_vm8, %v355_v33 }
 0x214   :  { %v467_v36 = vpop.f32.mrb[6].mxu1 }
 0x215   :  { %v358_v37 = vadd.f32 %v467_v36, %v108_v34  ;;  %v334_v38 = vpop.f32.mrb[7].mxu1 }
 0x216   :  { %v357_v39 = vadd.f32 %v334_v38, %v107_v35 }
 0x217   :  { %375 = vst.msk [vmem:[%s755_s2 + $0x78] sm:$0xff] %vm15_vm8, %v358_v37 }
 0x218   :  { %374 = vst.msk [vmem:[%s755_s2 + $0x70] sm:$0xff] %vm15_vm8, %v357_v39 }

</bundles_post_ra>
